<compile_context>
chip_gen: v6e
topology: v6e:2x2x1
jax: 0.10.0
libtpu: 0.0.40
codegen_flags: <defaults>
</compile_context>

<pallas_src>
import jax
import jax.numpy as jnp
from jax import lax
from jax.experimental import pallas as pl
from jax.experimental.pallas import tpu as pltpu

ACTION_SPACE = [0, 1, 2, 3]

NUM_INPUT = 8      # LunarLander-v2 observation dim
NUM_ACTION = 4     # len(ACTION_SPACE)
HIDDEN = 64        # logical hidden width (as in the PyTorch module)

H_PAD = 128        # lane-dense hidden width   (zeros in cols 64..127)
A_PAD = 128        # lane-dense action width   (zeros / masked in cols 4..127)
TB_MAX = 512       # max batch rows per grid step

_NEG = -1e30       # "minus infinity" for masked padded logit lanes


def reinforce_kernel(x_ref, u_ref, w1_ref, b1_ref, w2_ref, b2_ref, out_ref):
    # ---- layer1 + ReLU (bf16 MXU, f32 accumulate) ----
    x = x_ref[...].astype(jnp.bfloat16)                              # (TB, 8)
    h = jnp.dot(x, w1_ref[...], preferred_element_type=jnp.float32) + b1_ref[...]
    h = jnp.maximum(h, 0.0)                                          # (TB, H_PAD) f32

    # ---- layer2 ----
    logits = jnp.dot(h.astype(jnp.bfloat16), w2_ref[...],
                     preferred_element_type=jnp.float32) + b2_ref[...]

    # Mask padded action lanes so they never contribute to softmax / sampling.
    lane = lax.broadcasted_iota(jnp.int32, logits.shape, 1)          # (TB, A_PAD)
    valid = lane < NUM_ACTION
    logits = jnp.where(valid, logits, _NEG)

    # ---- numerically-stable log-softmax (f32) ----
    m = jnp.max(logits, axis=-1, keepdims=True)
    z = logits - m
    e = jnp.exp(z)                                                   # padded lanes -> 0
    s = jnp.sum(e, axis=-1, keepdims=True)
    logp = z - jnp.log(s)                                            # (TB, A_PAD)

    # ---- inverse-CDF categorical sampling (reuses e and s; no extra EUP work) ----
    # cdf_i = sum_{j<=i} e_j  via a tiny lower-triangular matmul on the MXU.
    row = lax.broadcasted_iota(jnp.int32, (A_PAD, A_PAD), 0)
    col = lax.broadcasted_iota(jnp.int32, (A_PAD, A_PAD), 1)
    tri = (row <= col).astype(jnp.float32)                           # constant (128,128)
    cdf = jnp.dot(e, tri, preferred_element_type=jnp.float32)        # (TB, A_PAD)

    t = u_ref[...] * s                                               # (TB, 1), t in [0, s)
    act_f = jnp.sum(jnp.where(valid & (cdf <= t), 1.0, 0.0),
                    axis=-1, keepdims=True)                          # index of sample
    act_f = jnp.minimum(act_f, float(NUM_ACTION - 1))                # guard rounding
    act = act_f.astype(jnp.int32)                                    # (TB, 1)

    # log-prob of the chosen action via a masked lane-sum (no gather needed)
    lpa = jnp.sum(jnp.where(lane == act, logp, 0.0), axis=-1, keepdims=True)

    # ---- single merged lane-dense output slab ----
    #   lanes 0..3 -> log-probs, lane 4 -> logp[action], lane 5 -> action (as f32)
    out = jnp.where(valid, logp, 0.0)
    out = jnp.where(lane == NUM_ACTION, lpa, out)
    out = jnp.where(lane == NUM_ACTION + 1, act_f, out)
    out_ref[...] = out


def _round_up(n, m):
    return ((n + m - 1) // m) * m


@jax.jit
def _forward_jit(x, key, w1, b1, w2, b2):
    B = x.shape[0]
    u = jax.random.uniform(key, (B, 1), jnp.float32)                 # one uniform / row

    b8 = _round_up(B, 8)
    if b8 <= 8:
        tb = 8
    else:
        # biggest tile up to TB_MAX while keeping >= 2 grid steps (v7x has 2 TCs)
        tb = min(TB_MAX, _round_up(pl.cdiv(b8, 2), 8))
    b_pad = _round_up(b8, tb)
    if b_pad != B:
        x = jnp.pad(x, ((0, b_pad - B), (0, 0)))
        u = jnp.pad(u, ((0, b_pad - B), (0, 0)), constant_values=0.5)

    grid = (b_pad // tb,)
    out = pl.pallas_call(
        reinforce_kernel,
        out_shape=jax.ShapeDtypeStruct((b_pad, A_PAD), jnp.float32),
        grid_spec=pltpu.PrefetchScalarGridSpec(
            num_scalar_prefetch=0,
            grid=grid,
            in_specs=[
                pl.BlockSpec((tb, NUM_INPUT), lambda i: (i, 0)),
                pl.BlockSpec((tb, 1), lambda i: (i, 0)),
                # grid-invariant weights / biases (constant index_map)
                pl.BlockSpec((NUM_INPUT, H_PAD), lambda i: (0, 0)),
                pl.BlockSpec((1, H_PAD), lambda i: (0, 0)),
                pl.BlockSpec((H_PAD, A_PAD), lambda i: (0, 0)),
                pl.BlockSpec((1, A_PAD), lambda i: (0, 0)),
            ],
            out_specs=pl.BlockSpec((tb, A_PAD), lambda i: (i, 0)),
        ),
        compiler_params=pltpu.CompilerParams(
            dimension_semantics=("parallel",)),   # shards batch blocks across TCs
    )(x, u, w1, b1, w2, b2)

    logp = out[:B, :NUM_ACTION]                  # (B, 4) log-probs
    lpa = out[:B, NUM_ACTION]                    # (B,)   logp[action]
    act = out[:B, NUM_ACTION + 1].astype(jnp.int32)   # (B,) sampled actions
    return logp, act, lpa


def reinforce_forward(x, params, key):
    """Batched policy forward + in-kernel categorical sampling.

    x: (B, NUM_INPUT) f32.  Returns (log_probs (B,4), action (B,), logp_action (B,)).
    """
    w1, b1, w2, b2 = params
    return _forward_jit(x, key, w1, b1, w2, b2)


@jax.jit
def _single_xla(x, key, w1, b1, w2, b2):
    # B=1 path stays on plain fused XLA (per perf review: pallas dispatch +
    # weight re-fetch dominates at tiny batches).
    h = jnp.maximum(
        jnp.dot(x.astype(jnp.bfloat16), w1, preferred_element_type=jnp.float32) + b1, 0.0)
    logits = (jnp.dot(h.astype(jnp.bfloat16), w2,
                      preferred_element_type=jnp.float32) + b2)[:, :NUM_ACTION]
    logp = jax.nn.log_softmax(logits, axis=-1)
    act = jax.random.categorical(key, logits, axis=-1)
    return act[0], logp[0, act[0]]


def reinforce_model(x_obs, params, key):
    """Single-observation ReinforceModel.forward semantics: (action, log_prob_action)."""
    x = jnp.asarray(x_obs, dtype=jnp.float32).reshape(1, NUM_INPUT)
    w1, b1, w2, b2 = params
    return _single_xla(x, key, w1, b1, w2, b2)


def init_params(key):
    """nn.Linear-style U(-1/sqrt(fan_in), 1/sqrt(fan_in)) init, stored pre-transposed
    as (in_features, out_features), zero-padded lane-dense, weights in bf16."""
    k1, k2, k3, k4 = jax.random.split(key, 4)
    bound1 = 1.0 / jnp.sqrt(jnp.float32(NUM_INPUT))
    bound2 = 1.0 / jnp.sqrt(jnp.float32(HIDDEN))
    w1 = jax.random.uniform(k1, (NUM_INPUT, HIDDEN), jnp.float32, -bound1, bound1)
    b1 = jax.random.uniform(k2, (HIDDEN,), jnp.float32, -bound1, bound1)
    w2 = jax.random.uniform(k3, (HIDDEN, NUM_ACTION), jnp.float32, -bound2, bound2)
    b2 = jax.random.uniform(k4, (NUM_ACTION,), jnp.float32, -bound2, bound2)
    # Zero padding is inert: padded hidden units stay 0 through ReLU, padded
    # action lanes are masked to -inf inside the kernel before softmax.
    w1p = jnp.zeros((NUM_INPUT, H_PAD), jnp.bfloat16).at[:, :HIDDEN].set(
        w1.astype(jnp.bfloat16))
    b1p = jnp.zeros((1, H_PAD), jnp.float32).at[0, :HIDDEN].set(b1)
    w2p = jnp.zeros((H_PAD, A_PAD), jnp.bfloat16).at[:HIDDEN, :NUM_ACTION].set(
        w2.astype(jnp.bfloat16))
    b2p = jnp.zeros((1, A_PAD), jnp.float32).at[0, :NUM_ACTION].set(b2)
    return w1p, b1p, w2p, b2p


if __name__ == "__main__":
    key = jax.random.PRNGKey(0)
    pkey, xkey, skey, skey2 = jax.random.split(key, 4)

    params = init_params(pkey)
    B = 16                                            # e.g. 16 vectorized envs
    x = jax.random.normal(xkey, (B, NUM_INPUT), jnp.float32)

    log_probs, actions, logp_actions = reinforce_forward(x, params, skey)
    jax.block_until_ready((log_probs, actions, logp_actions))

    # ---- pure-JAX reference check of the kernel math (same bf16 casts) ----
    w1p, b1p, w2p, b2p = params
    h_ref = jnp.maximum(
        jnp.dot(x.astype(jnp.bfloat16), w1p[:, :HIDDEN],
                preferred_element_type=jnp.float32) + b1p[:, :HIDDEN], 0.0)
    logits_ref = jnp.dot(h_ref.astype(jnp.bfloat16), w2p[:HIDDEN, :NUM_ACTION],
                         preferred_element_type=jnp.float32) + b2p[:, :NUM_ACTION]
    logp_ref = jax.nn.log_softmax(logits_ref, axis=-1)

    assert jnp.allclose(log_probs, logp_ref, atol=1e-3), "log-softmax mismatch"
    assert bool(jnp.all((actions >= 0) & (actions < NUM_ACTION))), "action out of range"
    lpa_ref = logp_ref[jnp.arange(B), actions]
    assert jnp.allclose(logp_actions, lpa_ref, atol=1e-3), "logp[action] mismatch"

    # ---- single-observation path (original module semantics, plain XLA) ----
    a0, lp0 = reinforce_model(x[0], params, skey2)
    a0, lp0 = jax.block_until_ready((a0, lp0))
    assert int(a0) in ACTION_SPACE
    assert bool(jnp.isfinite(lp0))

    print("KERNEL_OK")
</pallas_src>

<mosaic_0001>
module attributes {stable_mosaic.version = 11 : i64} {
  func.func @reinforce_kernel(%arg0: i32, %arg1: memref<8x8xf32, #tpu.memory_space<vmem>>, %arg2: memref<8x1xf32, #tpu.memory_space<vmem>>, %arg3: memref<8x128xbf16, #tpu.memory_space<vmem>>, %arg4: memref<1x128xf32, #tpu.memory_space<vmem>>, %arg5: memref<128x128xbf16, #tpu.memory_space<vmem>>, %arg6: memref<1x128xf32, #tpu.memory_space<vmem>>, %arg7: memref<8x128xf32, #tpu.memory_space<vmem>>) attributes {dimension_semantics = [#tpu.dimension_semantics<parallel>], iteration_bounds = array<i64: 2>, scalar_prefetch = 0 : i64, scratch_operands = 0 : i64, tpu.core_type = #tpu.core_type<tc>, window_params = [{transform_indices = @transform_0, window_bounds = array<i64: 8, 8>}, {transform_indices = @transform_1, window_bounds = array<i64: 8, 1>}, {pipeline_mode = #tpu.pipeline_mode<synchronous>, transform_indices = @transform_2, window_bounds = array<i64: 8, 128>}, {pipeline_mode = #tpu.pipeline_mode<synchronous>, transform_indices = @transform_3, window_bounds = array<i64: 1, 128>}, {pipeline_mode = #tpu.pipeline_mode<synchronous>, transform_indices = @transform_4, window_bounds = array<i64: 128, 128>}, {pipeline_mode = #tpu.pipeline_mode<synchronous>, transform_indices = @transform_5, window_bounds = array<i64: 1, 128>}, {transform_indices = @transform_6, window_bounds = array<i64: 8, 128>}]} {
    %c0 = arith.constant 0 : index
    %c0_0 = arith.constant 0 : index
    %0 = vector.load %arg1[%c0, %c0_0] : memref<8x8xf32, #tpu.memory_space<vmem>>, vector<8x8xf32>
    %1 = arith.truncf %0 : vector<8x8xf32> to vector<8x8xbf16>
    %c0_1 = arith.constant 0 : index
    %c0_2 = arith.constant 0 : index
    %2 = vector.load %arg3[%c0_1, %c0_2] : memref<8x128xbf16, #tpu.memory_space<vmem>>, vector<8x128xbf16>
    %cst = arith.constant dense<0.000000e+00> : vector<8x128xf32>
    %3 = tpu.matmul %1, %2, %cst {dimension_numbers = #tpu.dot_dimension_numbers<[1], [0], [0], [1], [0, 0, 1, 1], [], []>} : vector<8x8xbf16>, vector<8x128xbf16>, vector<8x128xf32> -> vector<8x128xf32>
    %c0_3 = arith.constant 0 : index
    %c0_4 = arith.constant 0 : index
    %4 = vector.load %arg4[%c0_3, %c0_4] : memref<1x128xf32, #tpu.memory_space<vmem>>, vector<1x128xf32>
    %5 = vector.broadcast %4 : vector<1x128xf32> to vector<8x128xf32>
    %6 = arith.addf %3, %5 : vector<8x128xf32>
    %cst_5 = arith.constant 0.000000e+00 : f32
    %7 = vector.broadcast %cst_5 : f32 to vector<8x128xf32>
    %8 = arith.maximumf %6, %7 : vector<8x128xf32>
    %9 = arith.truncf %8 : vector<8x128xf32> to vector<8x128xbf16>
    %c0_6 = arith.constant 0 : index
    %c0_7 = arith.constant 0 : index
    %10 = vector.load %arg5[%c0_6, %c0_7] : memref<128x128xbf16, #tpu.memory_space<vmem>>, vector<128x128xbf16>
    %cst_8 = arith.constant dense<0.000000e+00> : vector<8x128xf32>
    %11 = tpu.matmul %9, %10, %cst_8 {dimension_numbers = #tpu.dot_dimension_numbers<[1], [0], [0], [1], [0, 0, 1, 1], [], []>} : vector<8x128xbf16>, vector<128x128xbf16>, vector<8x128xf32> -> vector<8x128xf32>
    %c0_9 = arith.constant 0 : index
    %c0_10 = arith.constant 0 : index
    %12 = vector.load %arg6[%c0_9, %c0_10] : memref<1x128xf32, #tpu.memory_space<vmem>>, vector<1x128xf32>
    %13 = vector.broadcast %12 : vector<1x128xf32> to vector<8x128xf32>
    %14 = arith.addf %11, %13 : vector<8x128xf32>
    %15 = tpu.iota {dimensions = array<i32: 1>} : vector<8x128xi32>
    %c4_i32 = arith.constant 4 : i32
    %16 = vector.broadcast %c4_i32 : i32 to vector<8x128xi32>
    %17 = arith.cmpi slt, %15, %16 : vector<8x128xi32>
    %cst_11 = arith.constant -1.000000e+30 : f32
    %18 = vector.broadcast %cst_11 : f32 to vector<8x128xf32>
    %19 = arith.select %17, %14, %18 : vector<8x128xi1>, vector<8x128xf32>
    %cst_12 = arith.constant dense<0xFF800000> : vector<8xf32>
    %20 = vector.multi_reduction <maximumf>, %19, %cst_12 [1] : vector<8x128xf32> to vector<8xf32>
    %21 = vector.shape_cast %20 : vector<8xf32> to vector<8x1xf32>
    %22 = vector.broadcast %21 : vector<8x1xf32> to vector<8x128xf32>
    %23 = arith.subf %19, %22 : vector<8x128xf32>
    %24 = math.exp %23 : vector<8x128xf32>
    %cst_13 = arith.constant dense<0.000000e+00> : vector<8xf32>
    %25 = vector.multi_reduction <add>, %24, %cst_13 [1] : vector<8x128xf32> to vector<8xf32>
    %26 = vector.shape_cast %25 : vector<8xf32> to vector<8x1xf32>
    %27 = math.log %26 : vector<8x1xf32>
    %28 = vector.broadcast %27 : vector<8x1xf32> to vector<8x128xf32>
    %29 = arith.subf %23, %28 : vector<8x128xf32>
    %30 = tpu.iota {dimensions = array<i32: 0>} : vector<128x128xi32>
    %31 = tpu.iota {dimensions = array<i32: 1>} : vector<128x128xi32>
    %32 = arith.cmpi sle, %30, %31 : vector<128x128xi32>
    %33 = arith.extui %32 : vector<128x128xi1> to vector<128x128xi32>
    %34 = arith.sitofp %33 : vector<128x128xi32> to vector<128x128xf32>
    %cst_14 = arith.constant dense<0.000000e+00> : vector<8x128xf32>
    %35 = tpu.matmul %24, %34, %cst_14 {dimension_numbers = #tpu.dot_dimension_numbers<[1], [0], [0], [1], [0, 0, 1, 1], [], []>} : vector<8x128xf32>, vector<128x128xf32>, vector<8x128xf32> -> vector<8x128xf32>
    %c0_15 = arith.constant 0 : index
    %c0_16 = arith.constant 0 : index
    %36 = vector.load %arg2[%c0_15, %c0_16] : memref<8x1xf32, #tpu.memory_space<vmem>>, vector<8x1xf32>
    %37 = arith.mulf %36, %26 : vector<8x1xf32>
    %38 = vector.broadcast %37 : vector<8x1xf32> to vector<8x128xf32>
    %39 = arith.cmpf ole, %35, %38 : vector<8x128xf32>
    %40 = arith.andi %17, %39 : vector<8x128xi1>
    %cst_17 = arith.constant 1.000000e+00 : f32
    %cst_18 = arith.constant 0.000000e+00 : f32
    %41 = vector.broadcast %cst_17 : f32 to vector<8x128xf32>
    %42 = vector.broadcast %cst_18 : f32 to vector<8x128xf32>
    %43 = arith.select %40, %41, %42 : vector<8x128xi1>, vector<8x128xf32>
    %cst_19 = arith.constant dense<0.000000e+00> : vector<8xf32>
    %44 = vector.multi_reduction <add>, %43, %cst_19 [1] : vector<8x128xf32> to vector<8xf32>
    %45 = vector.shape_cast %44 : vector<8xf32> to vector<8x1xf32>
    %cst_20 = arith.constant 3.000000e+00 : f32
    %46 = vector.broadcast %cst_20 : f32 to vector<8x1xf32>
    %47 = arith.minimumf %45, %46 : vector<8x1xf32>
    %48 = arith.fptosi %47 : vector<8x1xf32> to vector<8x1xi32>
    %49 = vector.broadcast %48 : vector<8x1xi32> to vector<8x128xi32>
    %50 = arith.cmpi eq, %15, %49 : vector<8x128xi32>
    %cst_21 = arith.constant 0.000000e+00 : f32
    %51 = vector.broadcast %cst_21 : f32 to vector<8x128xf32>
    %52 = arith.select %50, %29, %51 : vector<8x128xi1>, vector<8x128xf32>
    %cst_22 = arith.constant dense<0.000000e+00> : vector<8xf32>
    %53 = vector.multi_reduction <add>, %52, %cst_22 [1] : vector<8x128xf32> to vector<8xf32>
    %54 = vector.shape_cast %53 : vector<8xf32> to vector<8x1xf32>
    %cst_23 = arith.constant 0.000000e+00 : f32
    %55 = vector.broadcast %cst_23 : f32 to vector<8x128xf32>
    %56 = arith.select %17, %29, %55 : vector<8x128xi1>, vector<8x128xf32>
    %c4_i32_24 = arith.constant 4 : i32
    %57 = vector.broadcast %c4_i32_24 : i32 to vector<8x128xi32>
    %58 = arith.cmpi eq, %15, %57 : vector<8x128xi32>
    %59 = vector.shape_cast %54 : vector<8x1xf32> to vector<8x1xf32>
    %60 = vector.broadcast %59 : vector<8x1xf32> to vector<8x128xf32>
    %61 = arith.select %58, %60, %56 : vector<8x128xi1>, vector<8x128xf32>
    %c5_i32 = arith.constant 5 : i32
    %62 = vector.broadcast %c5_i32 : i32 to vector<8x128xi32>
    %63 = arith.cmpi eq, %15, %62 : vector<8x128xi32>
    %64 = vector.shape_cast %47 : vector<8x1xf32> to vector<8x1xf32>
    %65 = vector.broadcast %64 : vector<8x1xf32> to vector<8x128xf32>
    %66 = arith.select %63, %65, %61 : vector<8x128xi1>, vector<8x128xf32>
    %c0_25 = arith.constant 0 : index
    %c0_26 = arith.constant 0 : index
    %67 = vector.load %arg7[%c0_25, %c0_26] : memref<8x128xf32, #tpu.memory_space<vmem>>, vector<8x128xf32>
    tpu.vector_store %arg7[%c0_25, %c0_26], %66 {strides = array<i32>} : memref<8x128xf32, #tpu.memory_space<vmem>>, vector<8x128xf32>,
    return
  }
  func.func @transform_0(%arg0: i32) -> (i32, i32) {
    %c0_i32 = arith.constant 0 : i32
    %c0_i32_0 = arith.constant 0 : i32
    return %arg0, %c0_i32 : i32, i32
  }
  func.func @transform_1(%arg0: i32) -> (i32, i32) {
    %c0_i32 = arith.constant 0 : i32
    %c0_i32_0 = arith.constant 0 : i32
    return %arg0, %c0_i32 : i32, i32
  }
  func.func @transform_2(%arg0: i32) -> (i32, i32) {
    %c0_i32 = arith.constant 0 : i32
    %c0_i32_0 = arith.constant 0 : i32
    %c0_i32_1 = arith.constant 0 : i32
    return %c0_i32, %c0_i32_0 : i32, i32
  }
  func.func @transform_3(%arg0: i32) -> (i32, i32) {
    %c0_i32 = arith.constant 0 : i32
    %c0_i32_0 = arith.constant 0 : i32
    %c0_i32_1 = arith.constant 0 : i32
    return %c0_i32, %c0_i32_0 : i32, i32
  }
  func.func @transform_4(%arg0: i32) -> (i32, i32) {
    %c0_i32 = arith.constant 0 : i32
    %c0_i32_0 = arith.constant 0 : i32
    %c0_i32_1 = arith.constant 0 : i32
    return %c0_i32, %c0_i32_0 : i32, i32
  }
  func.func @transform_5(%arg0: i32) -> (i32, i32) {
    %c0_i32 = arith.constant 0 : i32
    %c0_i32_0 = arith.constant 0 : i32
    %c0_i32_1 = arith.constant 0 : i32
    return %c0_i32, %c0_i32_0 : i32, i32
  }
  func.func @transform_6(%arg0: i32) -> (i32, i32) {
    %c0_i32 = arith.constant 0 : i32
    %c0_i32_0 = arith.constant 0 : i32
    return %arg0, %c0_i32 : i32, i32
  }
}

</mosaic_0001>

<bundles_post_ra>
// kernel: _forward_jit.1
= control target key start
LH: loop header
LB: loop body
LE: loop exit
PB: predicated region body
PF: predicated region fallthrough
CT: control target
= control target key end

     0   :  { %11 = vsyncpa [#allocation3], 0  ;;  %s960_s21 = smov 0   ;;  %s1123_s0 = inlined_call_operand.vmem [shape: f32[16,8], index: 0, kind: input, shape index: {}]   ;;  %s1124_s1 = inlined_call_operand.vmem [shape: f32[16,1], index: 1, kind: input, shape index: {}]   ;;  %s1125_s2 = inlined_call_operand.hbm [shape: bf16[8,128], index: 2, kind: input, shape index: {}]   ;;  %s1126_s3 = inlined_call_operand.vmem [shape: f32[1,128], index: 3, kind: input, shape index: {}]   ;;  %s1127_s4 = inlined_call_operand.vmem [shape: bf16[128,128], index: 4, kind: input, shape index: {}]   ;;  %s1128_s5 = inlined_call_operand.vmem [shape: f32[1,128], index: 5, kind: input, shape index: {}]   ;;  %s1129_s6 = inlined_call_operand.vmem [shape: f32[16,128], index: 6, kind: output, shape index: {}]  }
   0x1 LB: > { %s699_s22 = sadd.s32 4294967295, %s918_s21   ;;  %p701_p0 = scmp.ge.s32.totalorder %s918_s21, 1  ;;  %s918_s21 = sphi %s960_s21, %s17_s21  }
   0x2   : > { %p184_p1 = scmp.lt.s32.totalorder %s918_s21, 3  ;;  %p853_p3 = scmp.eq.s32.totalorder %s699_s22, 0 }
   0x3   : > { %s920_s24 = smov [#allocation2]  }
   0x4   : > { %p968_p2 = pnand %p701_p0, %p184_p1  ;;  %s197_s25 = sshll.u32 %s920_s24, 4  ;;  %s198_s25 = int_to_ptr.vmem [resolvable:$true] %s197_s25 }
   0x5   : > { %s893_s26 = scalar_lea.vmem %s198_s25, 64  ;;  %p901_p10 = scmp.lt.s32.totalorder %s198_s25, %s198_s25 }
   0x6   : > { %p849_p4 = pneg %p968_p2  ;;  %p894_p7 = scmp.ne.s32.totalorder %s198_s25, %s893_s26 }
   0x7   : > { %p902_p11 = scmp.lt.s32.totalorder %s893_s26, %s893_s26 }
   0x8   : > { %p850_p5 = pnand %p853_p3, %p849_p4 }
   0x9   : > { %p903_p12 = por %p902_p11, %p901_p10 }
   0xa   : > { %p884_p6 = pneg %p850_p5 }
   0xc   : > { %p896_p8 = pnand %p894_p7, %p884_p6 }
   0xe   : > { %p897_p9 = pneg %p896_p8 }
  0x10   : > { %p904_p13 = pnand %p903_p12, %p897_p9 }
  0x12   : > { %907 = shalt.err (!%p904_p13)
}
  0x13   : > { %852 = dma.hbm_to_vmem [thread:$0]  (!%p850_p5), %s1125_s2, 64, %s198_s25, [#allocation3]  }
  0x14   : > { %233 = sbr.rel (%p968_p2) target bundleno = 1139 (0x473), region = 44 }
  0x19   : > { %913 = dma.done.wait (%p853_p3), [#allocation3], 64  }
  0x1a   : > { %915 = vsyncadd (%p853_p3), [#allocation3], 4294967232  ;;  %p265_p0 = scmp.lt.s32.totalorder %s699_s22, 1  ;;  %v921_v0 = vmov 0.0   ;;  %vm922_vm0 = vmmov 0   ;;  %vm292_vm1 = vcmask 1043456   ;;  %v449_v21 = vlaneseq }
  0x1b   : > { %782 = vmatprep.subr.bf16.mxu0 %v921_v0  ;;  %784 = vmatprep.mubr.msk.bf16.mxu0 %vm922_vm0, %v921_v0  ;;  %v280_v1 = vld [vmem:[#allocation2] sm:$0xf]  ;;  %v870_v5 = vld [vmem:[%s1127_s4 + $0x38] sm:$0xff]   ;;  %vm288_vm2 = vcmask 64512   ;;  %v871_v6 = vld [vmem:[%s1127_s4 + $0x30] sm:$0xff]   ;;  %v923_v28 = vmov 1.0  }
  0x1c   : > { %s1132_s22 = smov (!%p265_p0, %s699_s22), 1  ;;  %788 = vmatprep.subr.bf16.mxu1 %v921_v0  ;;  %804 = vmatprep.mubr.msk.bf16.mxu1 %vm922_vm0, %v921_v0  ;;  %v294_v3 = vsel %vm292_vm1, %v280_v1, 0  ;;  %v872_v7 = vld [vmem:[%s1127_s4 + $0x28] sm:$0xff]   ;;  %v873_v8 = vld [vmem:[%s1127_s4 + $0x20] sm:$0xff]   ;;  %v874_v9 = vld [vmem:[%s1127_s4 + $0x18] sm:$0xff]   ;;  %v1031_v22 = vshrl.u32 %v449_v21, 7 }
  0x1d   : > { %s988_s29 = sshll.u32 %s1132_s22, 3  ;;  %783 = vmatpush3.bf16.msra.mxu0 %v294_v3  ;;  %789 = vmatpush3.bf16.msra.mxu1 %v870_v5  ;;  %v875_v10 = vld [vmem:[%s1127_s4 + $0x10] sm:$0xff]   ;;  %v876_v11 = vld [vmem:[%s1127_s4 + $0x8] sm:$0xff]   ;;  %v877_v12 = vld [vmem:[%s1127_s4] sm:$0xff]   ;;  %v1033_v23 = vand.u32 127, %v449_v21  ;;  %v924_v51 = vmov 0  }
  0x1e   : > { %s268_s8 = scalar_lea.vmem %s1123_s0, %s988_s29  ;;  %808 = vmatprep.subr.mxu0 %v921_v0  ;;  %790 = vmatprep.subr.bf16.mxu1 %v921_v0  ;;  %v709_v13 = vld [vmem:[%s1126_s3] ss:$0 sm:$0xff]  ;;  %v479_v24 = vadd.s32 120, %v1031_v22  ;;  %v478_v25 = vadd.s32 112, %v1031_v22  ;;  %v477_v26 = vadd.s32 104, %v1031_v22  ;;  %v476_v27 = vadd.s32 96, %v1031_v22  ;;  %s272_s9 = scalar_lea.vmem %s1124_s1, %s988_s29 }
  0x1f   : > { %v278_v2 = vld [vmem:[%s268_s8] sm:$0xff]  ;;  %v475_v29 = vadd.s32 88, %v1031_v22  ;;  %v474_v30 = vadd.s32 80, %v1031_v22  ;;  %v473_v31 = vadd.s32 72, %v1031_v22  ;;  %vm451_vm10 = vcmp.lt.s32.totalorder %v1033_v23, 4  ;;  %868 = vset.pattern.permute.xlu1 %v924_v51  ;;  %869 = vset.pattern.permute.xlu0 %v924_v51  ;;  %s276_s12 = scalar_lea.vmem %s1129_s6, %s988_s29 }
  0x20   : > { %v279_v4 = vpack.c.bf16 %v278_v2, %v278_v2  ;;  %vm495_vm3 = vcmp.le.s32.totalorder %v479_v24, %v1033_v23  ;;  %vm494_vm4 = vcmp.le.s32.totalorder %v478_v25, %v1033_v23  ;;  %vm493_vm5 = vcmp.le.s32.totalorder %v477_v26, %v1033_v23  ;;  %v711_v32 = vld [vmem:[%s1128_s5] ss:$0 sm:$0xff] }
  0x21   : > { %791 = vmatpush3.bf16.msra.mxu1 %v871_v6  ;;  %vm492_vm6 = vcmp.le.s32.totalorder %v476_v27, %v1033_v23  ;;  %vm491_vm7 = vcmp.le.s32.totalorder %v475_v29, %v1033_v23  ;;  %vm490_vm8 = vcmp.le.s32.totalorder %v474_v30, %v1033_v23  ;;  %vm489_vm9 = vcmp.le.s32.totalorder %v473_v31, %v1033_v23  ;;  %v598_v52 = vld [vmem:[%s272_s9] sm:$0xff] }
  0x22   : > { %785 = vmatmul.mubr.msk.bf16.vlgmr.msra.gmra.mxu0 %vm288_vm2, %v279_v4  ;;  %792 = vmatprep.subr.bf16.mxu1 %v921_v0  ;;  %v472_v39 = vadd.s32 64, %v1031_v22  ;;  %v471_v40 = vadd.s32 56, %v1031_v22  ;;  %v470_v41 = vadd.s32 48, %v1031_v22  ;;  %v469_v42 = vadd.s32 40, %v1031_v22 }
  0x23   : > { %840 = vmatprep.mubr.msk.f32.mxu0 %vm922_vm0, %v921_v0  ;;  %809 = vmatpush3.msk.msra.mxu0 %vm495_vm3, %v923_v28  ;;  %v468_v43 = vadd.s32 32, %v1031_v22  ;;  %v467_v44 = vadd.s32 24, %v1031_v22  ;;  %v466_v45 = vadd.s32 16, %v1031_v22  ;;  %v465_v46 = vadd.s32 8, %v1031_v22 }
  0x24   : > { %810 = vmatprep.subr.mxu0 %v921_v0  ;;  %vm488_vm11 = vcmp.le.s32.totalorder %v472_v39, %v1033_v23  ;;  %vm487_vm12 = vcmp.le.s32.totalorder %v471_v40, %v1033_v23  ;;  %vm486_vm13 = vcmp.le.s32.totalorder %v470_v41, %v1033_v23  ;;  %vm485_vm14 = vcmp.le.s32.totalorder %v469_v42, %v1033_v23 }
  0x25   : > { %793 = vmatpush3.bf16.msra.mxu1 %v872_v7  ;;  %811 = vmatpush3.msk.msra.mxu0 %vm494_vm4, %v923_v28  ;;  %vm484_vm15 = vcmp.le.s32.totalorder %v468_v43, %v1033_v23  ;;  %vm483_vm0 = vcmp.le.s32.totalorder %v467_v44, %v1033_v23  ;;  %vm482_vm1 = vcmp.le.s32.totalorder %v466_v45, %v1033_v23 }
  0x26   : > { %794 = vmatprep.subr.bf16.mxu1 %v921_v0  ;;  %812 = vmatprep.subr.mxu0 %v921_v0  ;;  %vm481_vm2 = vcmp.le.s32.totalorder %v465_v46, %v1033_v23  ;;  %vm480_vm3 = vcmp.le.s32.totalorder %v1031_v22, %v1033_v23 }
  0x27   : > { %813 = vmatpush3.msk.msra.mxu0 %vm493_vm5, %v923_v28 }
  0x28   : > { %814 = vmatprep.subr.mxu0 %v921_v0 }
  0x29   : > { %795 = vmatpush3.bf16.msra.mxu1 %v873_v8  ;;  %815 = vmatpush3.msk.msra.mxu0 %vm492_vm6, %v923_v28 }
  0x2a   : > { %796 = vmatprep.subr.bf16.mxu1 %v921_v0  ;;  %816 = vmatprep.subr.mxu0 %v921_v0 }
  0x2b   : > { %817 = vmatpush3.msk.msra.mxu0 %vm491_vm7, %v923_v28  ;;  %vm617_vm7 = vcmp.eq.s32.totalorder %v1033_v23, 4 }
  0x2c   : > { %818 = vmatprep.subr.mxu0 %v921_v0 }
  0x2d   : > { %797 = vmatpush3.bf16.msra.mxu1 %v874_v9  ;;  %819 = vmatpush3.msk.msra.mxu0 %vm490_vm8, %v923_v28  ;;  %vm619_vm8 = vcmp.eq.s32.totalorder %v1033_v23, 5 }
  0x2e   : > { %798 = vmatprep.subr.bf16.mxu1 %v921_v0  ;;  %820 = vmatprep.subr.mxu0 %v921_v0 }
  0x2f   : > { %821 = vmatpush3.msk.msra.mxu0 %vm489_vm9, %v923_v28 }
  0x30   : > { %822 = vmatprep.subr.mxu0 %v921_v0 }
  0x31   : > { %799 = vmatpush3.bf16.msra.mxu1 %v875_v10  ;;  %823 = vmatpush3.msk.msra.mxu0 %vm488_vm11, %v923_v28 }
  0x32   : > { %800 = vmatprep.subr.bf16.mxu1 %v921_v0  ;;  %824 = vmatprep.subr.mxu0 %v921_v0 }
  0x33   : > { %825 = vmatpush3.msk.msra.mxu0 %vm487_vm12, %v923_v28 }
  0x34   : > { %826 = vmatprep.subr.mxu0 %v921_v0 }
  0x35   : > { %801 = vmatpush3.bf16.msra.mxu1 %v876_v11  ;;  %827 = vmatpush3.msk.msra.mxu0 %vm486_vm13, %v923_v28 }
  0x36   : > { %802 = vmatprep.subr.bf16.mxu1 %v921_v0  ;;  %828 = vmatprep.subr.mxu0 %v921_v0 }
  0x37   : > { %829 = vmatpush3.msk.msra.mxu0 %vm485_vm14, %v923_v28 }
  0x38   : > { %830 = vmatprep.subr.mxu0 %v921_v0 }
  0x39   : > { %803 = vmatpush3.bf16.msra.mxu1 %v877_v12  ;;  %831 = vmatpush3.msk.msra.mxu0 %vm484_vm15, %v923_v28 }
  0x3a   : > { %832 = vmatprep.subr.mxu0 %v921_v0 }
  0x3b   : > { %833 = vmatpush3.msk.msra.mxu0 %vm483_vm0, %v923_v28 }
  0x3c   : > { %834 = vmatprep.subr.mxu0 %v921_v0 }
  0x3d   : > { %835 = vmatpush3.msk.msra.mxu0 %vm482_vm1, %v923_v28 }
  0x3e   : > { %836 = vmatprep.subr.mxu0 %v921_v0 }
  0x3f   : > { %837 = vmatpush3.msk.msra.mxu0 %vm481_vm2, %v923_v28 }
  0x40   : > { %838 = vmatprep.subr.mxu0 %v921_v0 }
  0x41   : > { %839 = vmatpush3.msk.msra.mxu0 %vm480_vm3, %v923_v28 }
  0xe2   : > { %v330_v14 = vpop.f32.mrf.mxu0 }
  0xe3   : > { %v331_v15 = vadd.f32 %v709_v13, %v330_v14 }
  0xe4   : > { %v786_v16 = vpop.f32.mrf.mxu0 }
  0xe5   : > { %v336_v17 = vmax.f32 %v331_v15, 0.0 }
  0xe6   : > { %v333_v18 = vpop.f32.mrf.mxu0 }
  0xe7   : > { %v337_v19 = vpack.c.bf16 %v336_v17, %v336_v17 }
  0xe8   : > { %v787_v20 = vpop.f32.mrf.mxu0 }
  0xe9   : > { %805 = vmatmul.mubr.bf16.vlgmr.msra.gmra.mxu1 %v337_v19 }
 0x1a9   : > { %v443_v33 = vpop.f32.mrf.mxu1 }
 0x1aa   : > { %v444_v34 = vadd.f32 %v711_v32, %v443_v33 }
 0x1ab   : > { %v806_v35 = vpop.f32.mrf.mxu1 }
 0x1ac   : > { %v452_v36 = vsel %vm451_vm10, %v444_v34, -1e+30 }
 0x1ad   : > { %453 = vmax.xlane.f32.xlu0 %v452_v36  ;;  %v446_v37 = vpop.f32.mrf.mxu1 }
 0x1af   : > { %v807_v38 = vpop.f32.mrf.mxu1 }
 0x236   : > { %v454_v47 = vpop.xlane.xlu0 %453 }
 0x237   : > { %v455_v48 = vsub.f32 %v452_v36, %v454_v47 }
 0x239   : > { %v456_v49 = vmul.f32 1.442695, %v455_v48 }
 0x23b   : > { %878 = vpow2.f32 %v456_v49 }
 0x248   : > { %v879_v50 = vpop.eup %878 }
 0x249   : > { %458 = vadd.xlane.f32.xlu0 %v879_v50  ;;  %841 = vmatmul.mubr.f32.vlgmr.msra.gmra.mxu0 %v879_v50 }
 0x2d2   : > { %v459_v53 = vpop.xlane.xlu0 %458 }
 0x2d3   : > { %v599_v54 = vmul.f32 %v598_v52, %v459_v53  ;;  %880 = vlog2.f32 %v459_v53 }
 0x2d5   : > { %602 = vperm.xlu1 %868, %v599_v54  }
 0x2e0   : > { %v881_v59 = vpop.eup %880 }
 0x2e1   : > { %v461_v62 = vmul.f32 0.6931472, %v881_v59 }
 0x2e3   : > { %v462_v2 = vsub.f32 %v455_v48, %v461_v62 }
 0x309   : > { %v594_v55 = vpop.f32.mrf.mxu0 }
 0x30b   : > { %v842_v56 = vpop.f32.mrf.mxu0 }
 0x350   : > { %v603_v57 = vpop.permute.xlu1 %602 }
 0x351   : > { %vm605_vm4 = vcmp.le.f32.partialorder %v594_v55, %v603_v57 }
 0x352   : > { %vm606_vm5 = vmand %vm451_vm10, %vm605_vm4 }
 0x353   : > { %v607_v58 = vsel %vm606_vm5, 1.0, %v921_v0  ;;  %v616_v0 = vsel %vm451_vm10, %v462_v2, 0.0 }
 0x354   : > { %608 = vadd.xlane.f32.xlu1 %v607_v58 }
 0x3dd   : > { %v609_v60 = vpop.xlane.xlu1 %608 }
 0x3de   : > { %v610_v61 = vmin.f32 %v609_v60, 3.0 }
 0x3e0   : > { %v843_v63 = vtrunc.f32 %v610_v61 }
 0x3e2   : > { %v844_v1 = vcvt.f32.s32 %v843_v63 }
 0x3e4   : > { %vm612_vm6 = vcmp.eq.s32.totalorder %v1033_v23, %v844_v1 }
 0x3e5   : > { %v613_v3 = vsel %vm612_vm6, %v462_v2, 0.0 }
 0x3e6   : > { %614 = vadd.xlane.f32.xlu0 %v613_v3 }
 0x46f   : > { %v615_v4 = vpop.xlane.xlu0 %614 }
 0x470   : > { %v618_v5 = vsel %vm617_vm7, %v615_v4, %v616_v0 }
 0x471   : > { %v620_v6 = vsel %vm619_vm8, %v610_v61, %v618_v5 }
 0x472   : > { %621 = vst [vmem:[%s276_s12] sm:$0xff] %v620_v6 }
 0x473 PF: > { %s17_s21 = sadd.s32 1, %s918_s21  }
 0x474   : > { %p14_p1 = scmp.ge.s32.totalorder %s17_s21, 4  }
 0x476   :  { %16 = sbr.rel (!%p14_p1) target bundleno = 1 (0x1), region = 82 }
 0x47b   :  { %641 = vsyncpa [#allocation3], 1 }
 0x47c   :  { %643 = vsyncpa [#allocation3 + $0x1], 1 }

</bundles_post_ra>
